<compile_context>
chip_gen: v6e
topology: v6e:2x2x1
jax: 0.10.0
libtpu: 0.0.40
codegen_flags: <defaults>
</compile_context>

<pallas_src>
import functools

import jax
import jax.numpy as jnp
from jax.experimental import pallas as pl
from jax.experimental.pallas import tpu as pltpu

_CHUNK = 1024           # lanes processed per inner-loop step (vreg-pressure control)
_MAX_TILE_CHUNKS = 64   # up to 64K lanes per grid step (amortizes ~0.35 us/step)
_SMALL_BATCH = 2048     # below this, skip pallas entirely (overhead-dominated)


def _sigmoid(v):
    # exp + reciprocal both land on the EUP slot -> free under the DMA-bound regime.
    return pl.reciprocal(1.0 + jnp.exp(-v), approx=False)


def mlp_kernel(w1_ref, b1_ref, w2_ref, b2_ref, x_ref, out_ref):
    """One grid step = one batch tile.

    x_ref:   (tile_chunks, 4, _CHUNK) bf16 VMEM, batch rides the lane axis.
    out_ref: (tile_chunks, 1, _CHUNK) f32  VMEM.
    w1_ref (4,5), b1_ref (5,), w2_ref (5,), b2_ref (1,): f32 scalars in SMEM.
    """
    tile_chunks = x_ref.shape[0]
    f_in = x_ref.shape[1]
    f_hid = b1_ref.shape[0]

    ones = jnp.ones((1, _CHUNK), jnp.float32)  # hoisted, reused by every chunk

    @pl.loop(0, tile_chunks)
    def _(c):
        xs = x_ref[c].astype(jnp.float32)        # (4, _CHUNK), bf16 -> f32 upcast
        o = b2_ref[0] * ones                     # output accumulator (starts at bias)
        for j in range(f_hid):                   # 5 hidden units
            h = b1_ref[j] * ones
            for k in range(f_in):                # 4 inputs -> 20 scalar*vector FMAs
                h = h + w1_ref[k, j] * xs[k:k + 1, :]
            o = o + w2_ref[j] * _sigmoid(h)      # 5 more FMAs
        out_ref[c] = _sigmoid(o).astype(out_ref.dtype)


def _forward_reference(x, w1, b1, w2, b2):
    h = 1.0 / (1.0 + jnp.exp(-(x @ w1 + b1[None, :])))
    return 1.0 / (1.0 + jnp.exp(-(h @ w2[:, None] + b2[None, :])))


@functools.partial(jax.jit, static_argnames=("force_pallas",))
def neural_network_forward(x, w1, b1, w2, b2, force_pallas=False):
    """Forward pass equivalent to the torch module.

    x:  (B, 4) float32              (PyTorch Linear input layout)
    w1: (4, 5)  = hidden.weight.T   b1: (5,)
    w2: (5,)    = output.weight[0]  b2: (1,)
    returns (B, 1) float32
    """
    B, f_in = x.shape
    w1 = w1.astype(jnp.float32)
    b1 = b1.astype(jnp.float32)
    w2 = w2.astype(jnp.float32)
    b2 = b2.astype(jnp.float32)

    if B < _SMALL_BATCH and not force_pallas:
        # Tiny batch: let XLA fuse this into whatever produced x.
        return _forward_reference(x, w1, b1, w2, b2)

    # ---- tile / grid selection (static python on shapes) ----
    n_chunks = pl.cdiv(B, _CHUNK)
    n_tiles = max(pl.cdiv(n_chunks, _MAX_TILE_CHUNKS), 2 if n_chunks >= 2 else 1)
    tile_chunks = pl.cdiv(n_chunks, n_tiles)
    n_tiles = pl.cdiv(n_chunks, tile_chunks)      # drop empty trailing tiles
    n_chunks_pad = tile_chunks * n_tiles
    b_pad = n_chunks_pad * _CHUNK

    # Lane-dense, chunked layout: (n_chunks_pad, 4, _CHUNK), batch on lanes, bf16 carry.
    x_t = jnp.zeros((f_in, b_pad), jnp.bfloat16)
    x_t = x_t.at[:, :B].set(x.T.astype(jnp.bfloat16))
    x_t = x_t.reshape(f_in, n_chunks_pad, _CHUNK).transpose(1, 0, 2)

    out = pl.pallas_call(
        mlp_kernel,
        out_shape=jax.ShapeDtypeStruct((n_chunks_pad, 1, _CHUNK), jnp.float32),
        grid_spec=pltpu.PrefetchScalarGridSpec(
            num_scalar_prefetch=0,
            grid=(n_tiles,),
            in_specs=[
                pl.BlockSpec(memory_space=pltpu.MemorySpace.SMEM),   # w1 (4,5)
                pl.BlockSpec(memory_space=pltpu.MemorySpace.SMEM),   # b1 (5,)
                pl.BlockSpec(memory_space=pltpu.MemorySpace.SMEM),   # w2 (5,)
                pl.BlockSpec(memory_space=pltpu.MemorySpace.SMEM),   # b2 (1,)
                pl.BlockSpec((tile_chunks, f_in, _CHUNK), lambda i: (i, 0, 0)),
            ],
            out_specs=pl.BlockSpec((tile_chunks, 1, _CHUNK), lambda i: (i, 0, 0)),
        ),
        compiler_params=pltpu.CompilerParams(
            # Batch tiles are independent -> shards across v7x's 2 TensorCores;
            # harmless on single-core v5e/v6e.
            dimension_semantics=("parallel",),
        ),
    )(w1, b1, w2, b2, x_t)

    out = out.transpose(1, 0, 2).reshape(1, b_pad)
    return out[:, :B].T                                  # PyTorch layout (B, 1)


if __name__ == "__main__":
    key = jax.random.PRNGKey(0)
    k_x, k_w1, k_b1, k_w2, k_b2 = jax.random.split(key, 5)

    # torch.nn.init.uniform_(-1, 1)-style parameters.
    w1 = jax.random.uniform(k_w1, (4, 5), minval=-1.0, maxval=1.0, dtype=jnp.float32)
    b1 = jax.random.uniform(k_b1, (5,), minval=-1.0, maxval=1.0, dtype=jnp.float32)
    w2 = jax.random.uniform(k_w2, (5,), minval=-1.0, maxval=1.0, dtype=jnp.float32)
    b2 = jax.random.uniform(k_b2, (1,), minval=-1.0, maxval=1.0, dtype=jnp.float32)

    # Small batch forced through the Pallas kernel (single 1024-lane tile).
    B_small = 8
    x_small = jax.random.normal(k_x, (B_small, 4), dtype=jnp.float32)
    out_small = jax.block_until_ready(
        neural_network_forward(x_small, w1, b1, w2, b2, force_pallas=True))
    ref_small = _forward_reference(x_small, w1, b1, w2, b2)
    assert out_small.shape == (B_small, 1)
    assert jnp.allclose(out_small, ref_small, atol=2e-2), "small-batch kernel mismatch"

    # Larger batch: auto path -> multi-tile grid (exercises padding + 2 grid steps).
    B_big = 2560
    x_big = jax.random.normal(k_x, (B_big, 4), dtype=jnp.float32)
    out_big = jax.block_until_ready(neural_network_forward(x_big, w1, b1, w2, b2))
    ref_big = _forward_reference(x_big, w1, b1, w2, b2)
    assert out_big.shape == (B_big, 1)
    assert jnp.allclose(out_big, ref_big, atol=2e-2), "multi-tile kernel mismatch"

    # Tiny-batch auto path (pure-jnp fallback; exact f32).
    out_fb = jax.block_until_ready(neural_network_forward(x_small, w1, b1, w2, b2))
    assert out_fb.shape == (B_small, 1)
    assert jnp.allclose(out_fb, ref_small, atol=1e-5), "fallback mismatch"

    print("KERNEL_OK")
</pallas_src>

<mosaic_0001>
module attributes {stable_mosaic.version = 11 : i64} {
  func.func @mlp_kernel(%arg0: i32, %arg1: memref<4x5xf32, #tpu.memory_space<smem>>, %arg2: memref<5xf32, #tpu.memory_space<smem>>, %arg3: memref<5xf32, #tpu.memory_space<smem>>, %arg4: memref<1xf32, #tpu.memory_space<smem>>, %arg5: memref<1x4x1024xbf16, #tpu.memory_space<vmem>>, %arg6: memref<1x1x1024xf32, #tpu.memory_space<vmem>>) attributes {dimension_semantics = [#tpu.dimension_semantics<parallel>], iteration_bounds = array<i64: 1>, scalar_prefetch = 0 : i64, scratch_operands = 0 : i64, tpu.core_type = #tpu.core_type<tc>, window_params = [{transform_indices = @transform_0, window_bounds = array<i64: 4, 5>}, {transform_indices = @transform_1, window_bounds = array<i64: 5>}, {transform_indices = @transform_2, window_bounds = array<i64: 5>}, {transform_indices = @transform_3, window_bounds = array<i64: 1>}, {transform_indices = @transform_4, window_bounds = array<i64: 1, 4, 1024>}, {transform_indices = @transform_5, window_bounds = array<i64: 1, 1, 1024>}]} {
    %cst = arith.constant 1.000000e+00 : f32
    %0 = vector.broadcast %cst : f32 to vector<1x1024xf32>
    %c0_i32 = arith.constant 0 : i32
    %c1_i32 = arith.constant 1 : i32
    %1 = arith.muli %c0_i32, %c1_i32 : i32
    %c0_i32_0 = arith.constant 0 : i32
    %2 = arith.addi %c0_i32_0, %1 : i32
    %3 = arith.index_cast %2 : i32 to index
    %c0 = arith.constant 0 : index
    %c0_1 = arith.constant 0 : index
    %4 = vector.load %arg5[%3, %c0, %c0_1] : memref<1x4x1024xbf16, #tpu.memory_space<vmem>>, vector<1x4x1024xbf16>
    %5 = vector.shape_cast %4 : vector<1x4x1024xbf16> to vector<4x1024xbf16>
    %6 = arith.extf %5 : vector<4x1024xbf16> to vector<4x1024xf32>
    %c0_2 = arith.constant 0 : index
    %7 = memref.load %arg4[%c0_2] : memref<1xf32, #tpu.memory_space<smem>>
    %8 = vector.broadcast %7 : f32 to vector<1x1024xf32>
    %9 = arith.mulf %8, %0 : vector<1x1024xf32>
    %c0_3 = arith.constant 0 : index
    %10 = memref.load %arg2[%c0_3] : memref<5xf32, #tpu.memory_space<smem>>
    %11 = vector.broadcast %10 : f32 to vector<1x1024xf32>
    %12 = arith.mulf %11, %0 : vector<1x1024xf32>
    %c0_4 = arith.constant 0 : index
    %c0_5 = arith.constant 0 : index
    %13 = memref.load %arg1[%c0_4, %c0_5] : memref<4x5xf32, #tpu.memory_space<smem>>
    %14 = vector.extract_strided_slice %6 {offsets = [0, 0], sizes = [1, 1024], strides = [1, 1]} : vector<4x1024xf32> to vector<1x1024xf32>
    %15 = vector.broadcast %13 : f32 to vector<1x1024xf32>
    %16 = arith.mulf %15, %14 : vector<1x1024xf32>
    %17 = arith.addf %12, %16 : vector<1x1024xf32>
    %c1 = arith.constant 1 : index
    %c0_6 = arith.constant 0 : index
    %18 = memref.load %arg1[%c1, %c0_6] : memref<4x5xf32, #tpu.memory_space<smem>>
    %19 = vector.extract_strided_slice %6 {offsets = [1, 0], sizes = [1, 1024], strides = [1, 1]} : vector<4x1024xf32> to vector<1x1024xf32>
    %20 = vector.broadcast %18 : f32 to vector<1x1024xf32>
    %21 = arith.mulf %20, %19 : vector<1x1024xf32>
    %22 = arith.addf %17, %21 : vector<1x1024xf32>
    %c2 = arith.constant 2 : index
    %c0_7 = arith.constant 0 : index
    %23 = memref.load %arg1[%c2, %c0_7] : memref<4x5xf32, #tpu.memory_space<smem>>
    %24 = vector.extract_strided_slice %6 {offsets = [2, 0], sizes = [1, 1024], strides = [1, 1]} : vector<4x1024xf32> to vector<1x1024xf32>
    %25 = vector.broadcast %23 : f32 to vector<1x1024xf32>
    %26 = arith.mulf %25, %24 : vector<1x1024xf32>
    %27 = arith.addf %22, %26 : vector<1x1024xf32>
    %c3 = arith.constant 3 : index
    %c0_8 = arith.constant 0 : index
    %28 = memref.load %arg1[%c3, %c0_8] : memref<4x5xf32, #tpu.memory_space<smem>>
    %29 = vector.extract_strided_slice %6 {offsets = [3, 0], sizes = [1, 1024], strides = [1, 1]} : vector<4x1024xf32> to vector<1x1024xf32>
    %30 = vector.broadcast %28 : f32 to vector<1x1024xf32>
    %31 = arith.mulf %30, %29 : vector<1x1024xf32>
    %32 = arith.addf %27, %31 : vector<1x1024xf32>
    %c0_9 = arith.constant 0 : index
    %33 = memref.load %arg3[%c0_9] : memref<5xf32, #tpu.memory_space<smem>>
    %cst_10 = arith.constant 0.000000e+00 : f32
    %34 = vector.broadcast %cst_10 : f32 to vector<1x1024xf32>
    %35 = arith.subf %34, %32 : vector<1x1024xf32>
    %36 = math.exp %35 : vector<1x1024xf32>
    %cst_11 = arith.constant 1.000000e+00 : f32
    %37 = vector.broadcast %cst_11 : f32 to vector<1x1024xf32>
    %38 = arith.addf %37, %36 : vector<1x1024xf32>
    %39 = tpu.reciprocal %38 : vector<1x1024xf32> -> vector<1x1024xf32>
    %40 = vector.broadcast %33 : f32 to vector<1x1024xf32>
    %41 = arith.mulf %40, %39 : vector<1x1024xf32>
    %42 = arith.addf %9, %41 : vector<1x1024xf32>
    %c1_12 = arith.constant 1 : index
    %43 = memref.load %arg2[%c1_12] : memref<5xf32, #tpu.memory_space<smem>>
    %44 = vector.broadcast %43 : f32 to vector<1x1024xf32>
    %45 = arith.mulf %44, %0 : vector<1x1024xf32>
    %c0_13 = arith.constant 0 : index
    %c1_14 = arith.constant 1 : index
    %46 = memref.load %arg1[%c0_13, %c1_14] : memref<4x5xf32, #tpu.memory_space<smem>>
    %47 = vector.extract_strided_slice %6 {offsets = [0, 0], sizes = [1, 1024], strides = [1, 1]} : vector<4x1024xf32> to vector<1x1024xf32>
    %48 = vector.broadcast %46 : f32 to vector<1x1024xf32>
    %49 = arith.mulf %48, %47 : vector<1x1024xf32>
    %50 = arith.addf %45, %49 : vector<1x1024xf32>
    %c1_15 = arith.constant 1 : index
    %c1_16 = arith.constant 1 : index
    %51 = memref.load %arg1[%c1_15, %c1_16] : memref<4x5xf32, #tpu.memory_space<smem>>
    %52 = vector.extract_strided_slice %6 {offsets = [1, 0], sizes = [1, 1024], strides = [1, 1]} : vector<4x1024xf32> to vector<1x1024xf32>
    %53 = vector.broadcast %51 : f32 to vector<1x1024xf32>
    %54 = arith.mulf %53, %52 : vector<1x1024xf32>
    %55 = arith.addf %50, %54 : vector<1x1024xf32>
    %c2_17 = arith.constant 2 : index
    %c1_18 = arith.constant 1 : index
    %56 = memref.load %arg1[%c2_17, %c1_18] : memref<4x5xf32, #tpu.memory_space<smem>>
    %57 = vector.extract_strided_slice %6 {offsets = [2, 0], sizes = [1, 1024], strides = [1, 1]} : vector<4x1024xf32> to vector<1x1024xf32>
    %58 = vector.broadcast %56 : f32 to vector<1x1024xf32>
    %59 = arith.mulf %58, %57 : vector<1x1024xf32>
    %60 = arith.addf %55, %59 : vector<1x1024xf32>
    %c3_19 = arith.constant 3 : index
    %c1_20 = arith.constant 1 : index
    %61 = memref.load %arg1[%c3_19, %c1_20] : memref<4x5xf32, #tpu.memory_space<smem>>
    %62 = vector.extract_strided_slice %6 {offsets = [3, 0], sizes = [1, 1024], strides = [1, 1]} : vector<4x1024xf32> to vector<1x1024xf32>
    %63 = vector.broadcast %61 : f32 to vector<1x1024xf32>
    %64 = arith.mulf %63, %62 : vector<1x1024xf32>
    %65 = arith.addf %60, %64 : vector<1x1024xf32>
    %c1_21 = arith.constant 1 : index
    %66 = memref.load %arg3[%c1_21] : memref<5xf32, #tpu.memory_space<smem>>
    %cst_22 = arith.constant 0.000000e+00 : f32
    %67 = vector.broadcast %cst_22 : f32 to vector<1x1024xf32>
    %68 = arith.subf %67, %65 : vector<1x1024xf32>
    %69 = math.exp %68 : vector<1x1024xf32>
    %cst_23 = arith.constant 1.000000e+00 : f32
    %70 = vector.broadcast %cst_23 : f32 to vector<1x1024xf32>
    %71 = arith.addf %70, %69 : vector<1x1024xf32>
    %72 = tpu.reciprocal %71 : vector<1x1024xf32> -> vector<1x1024xf32>
    %73 = vector.broadcast %66 : f32 to vector<1x1024xf32>
    %74 = arith.mulf %73, %72 : vector<1x1024xf32>
    %75 = arith.addf %42, %74 : vector<1x1024xf32>
    %c2_24 = arith.constant 2 : index
    %76 = memref.load %arg2[%c2_24] : memref<5xf32, #tpu.memory_space<smem>>
    %77 = vector.broadcast %76 : f32 to vector<1x1024xf32>
    %78 = arith.mulf %77, %0 : vector<1x1024xf32>
    %c0_25 = arith.constant 0 : index
    %c2_26 = arith.constant 2 : index
    %79 = memref.load %arg1[%c0_25, %c2_26] : memref<4x5xf32, #tpu.memory_space<smem>>
    %80 = vector.extract_strided_slice %6 {offsets = [0, 0], sizes = [1, 1024], strides = [1, 1]} : vector<4x1024xf32> to vector<1x1024xf32>
    %81 = vector.broadcast %79 : f32 to vector<1x1024xf32>
    %82 = arith.mulf %81, %80 : vector<1x1024xf32>
    %83 = arith.addf %78, %82 : vector<1x1024xf32>
    %c1_27 = arith.constant 1 : index
    %c2_28 = arith.constant 2 : index
    %84 = memref.load %arg1[%c1_27, %c2_28] : memref<4x5xf32, #tpu.memory_space<smem>>
    %85 = vector.extract_strided_slice %6 {offsets = [1, 0], sizes = [1, 1024], strides = [1, 1]} : vector<4x1024xf32> to vector<1x1024xf32>
    %86 = vector.broadcast %84 : f32 to vector<1x1024xf32>
    %87 = arith.mulf %86, %85 : vector<1x1024xf32>
    %88 = arith.addf %83, %87 : vector<1x1024xf32>
    %c2_29 = arith.constant 2 : index
    %c2_30 = arith.constant 2 : index
    %89 = memref.load %arg1[%c2_29, %c2_30] : memref<4x5xf32, #tpu.memory_space<smem>>
    %90 = vector.extract_strided_slice %6 {offsets = [2, 0], sizes = [1, 1024], strides = [1, 1]} : vector<4x1024xf32> to vector<1x1024xf32>
    %91 = vector.broadcast %89 : f32 to vector<1x1024xf32>
    %92 = arith.mulf %91, %90 : vector<1x1024xf32>
    %93 = arith.addf %88, %92 : vector<1x1024xf32>
    %c3_31 = arith.constant 3 : index
    %c2_32 = arith.constant 2 : index
    %94 = memref.load %arg1[%c3_31, %c2_32] : memref<4x5xf32, #tpu.memory_space<smem>>
    %95 = vector.extract_strided_slice %6 {offsets = [3, 0], sizes = [1, 1024], strides = [1, 1]} : vector<4x1024xf32> to vector<1x1024xf32>
    %96 = vector.broadcast %94 : f32 to vector<1x1024xf32>
    %97 = arith.mulf %96, %95 : vector<1x1024xf32>
    %98 = arith.addf %93, %97 : vector<1x1024xf32>
    %c2_33 = arith.constant 2 : index
    %99 = memref.load %arg3[%c2_33] : memref<5xf32, #tpu.memory_space<smem>>
    %cst_34 = arith.constant 0.000000e+00 : f32
    %100 = vector.broadcast %cst_34 : f32 to vector<1x1024xf32>
    %101 = arith.subf %100, %98 : vector<1x1024xf32>
    %102 = math.exp %101 : vector<1x1024xf32>
    %cst_35 = arith.constant 1.000000e+00 : f32
    %103 = vector.broadcast %cst_35 : f32 to vector<1x1024xf32>
    %104 = arith.addf %103, %102 : vector<1x1024xf32>
    %105 = tpu.reciprocal %104 : vector<1x1024xf32> -> vector<1x1024xf32>
    %106 = vector.broadcast %99 : f32 to vector<1x1024xf32>
    %107 = arith.mulf %106, %105 : vector<1x1024xf32>
    %108 = arith.addf %75, %107 : vector<1x1024xf32>
    %c3_36 = arith.constant 3 : index
    %109 = memref.load %arg2[%c3_36] : memref<5xf32, #tpu.memory_space<smem>>
    %110 = vector.broadcast %109 : f32 to vector<1x1024xf32>
    %111 = arith.mulf %110, %0 : vector<1x1024xf32>
    %c0_37 = arith.constant 0 : index
    %c3_38 = arith.constant 3 : index
    %112 = memref.load %arg1[%c0_37, %c3_38] : memref<4x5xf32, #tpu.memory_space<smem>>
    %113 = vector.extract_strided_slice %6 {offsets = [0, 0], sizes = [1, 1024], strides = [1, 1]} : vector<4x1024xf32> to vector<1x1024xf32>
    %114 = vector.broadcast %112 : f32 to vector<1x1024xf32>
    %115 = arith.mulf %114, %113 : vector<1x1024xf32>
    %116 = arith.addf %111, %115 : vector<1x1024xf32>
    %c1_39 = arith.constant 1 : index
    %c3_40 = arith.constant 3 : index
    %117 = memref.load %arg1[%c1_39, %c3_40] : memref<4x5xf32, #tpu.memory_space<smem>>
    %118 = vector.extract_strided_slice %6 {offsets = [1, 0], sizes = [1, 1024], strides = [1, 1]} : vector<4x1024xf32> to vector<1x1024xf32>
    %119 = vector.broadcast %117 : f32 to vector<1x1024xf32>
    %120 = arith.mulf %119, %118 : vector<1x1024xf32>
    %121 = arith.addf %116, %120 : vector<1x1024xf32>
    %c2_41 = arith.constant 2 : index
    %c3_42 = arith.constant 3 : index
    %122 = memref.load %arg1[%c2_41, %c3_42] : memref<4x5xf32, #tpu.memory_space<smem>>
    %123 = vector.extract_strided_slice %6 {offsets = [2, 0], sizes = [1, 1024], strides = [1, 1]} : vector<4x1024xf32> to vector<1x1024xf32>
    %124 = vector.broadcast %122 : f32 to vector<1x1024xf32>
    %125 = arith.mulf %124, %123 : vector<1x1024xf32>
    %126 = arith.addf %121, %125 : vector<1x1024xf32>
    %c3_43 = arith.constant 3 : index
    %c3_44 = arith.constant 3 : index
    %127 = memref.load %arg1[%c3_43, %c3_44] : memref<4x5xf32, #tpu.memory_space<smem>>
    %128 = vector.extract_strided_slice %6 {offsets = [3, 0], sizes = [1, 1024], strides = [1, 1]} : vector<4x1024xf32> to vector<1x1024xf32>
    %129 = vector.broadcast %127 : f32 to vector<1x1024xf32>
    %130 = arith.mulf %129, %128 : vector<1x1024xf32>
    %131 = arith.addf %126, %130 : vector<1x1024xf32>
    %c3_45 = arith.constant 3 : index
    %132 = memref.load %arg3[%c3_45] : memref<5xf32, #tpu.memory_space<smem>>
    %cst_46 = arith.constant 0.000000e+00 : f32
    %133 = vector.broadcast %cst_46 : f32 to vector<1x1024xf32>
    %134 = arith.subf %133, %131 : vector<1x1024xf32>
    %135 = math.exp %134 : vector<1x1024xf32>
    %cst_47 = arith.constant 1.000000e+00 : f32
    %136 = vector.broadcast %cst_47 : f32 to vector<1x1024xf32>
    %137 = arith.addf %136, %135 : vector<1x1024xf32>
    %138 = tpu.reciprocal %137 : vector<1x1024xf32> -> vector<1x1024xf32>
    %139 = vector.broadcast %132 : f32 to vector<1x1024xf32>
    %140 = arith.mulf %139, %138 : vector<1x1024xf32>
    %141 = arith.addf %108, %140 : vector<1x1024xf32>
    %c4 = arith.constant 4 : index
    %142 = memref.load %arg2[%c4] : memref<5xf32, #tpu.memory_space<smem>>
    %143 = vector.broadcast %142 : f32 to vector<1x1024xf32>
    %144 = arith.mulf %143, %0 : vector<1x1024xf32>
    %c0_48 = arith.constant 0 : index
    %c4_49 = arith.constant 4 : index
    %145 = memref.load %arg1[%c0_48, %c4_49] : memref<4x5xf32, #tpu.memory_space<smem>>
    %146 = vector.extract_strided_slice %6 {offsets = [0, 0], sizes = [1, 1024], strides = [1, 1]} : vector<4x1024xf32> to vector<1x1024xf32>
    %147 = vector.broadcast %145 : f32 to vector<1x1024xf32>
    %148 = arith.mulf %147, %146 : vector<1x1024xf32>
    %149 = arith.addf %144, %148 : vector<1x1024xf32>
    %c1_50 = arith.constant 1 : index
    %c4_51 = arith.constant 4 : index
    %150 = memref.load %arg1[%c1_50, %c4_51] : memref<4x5xf32, #tpu.memory_space<smem>>
    %151 = vector.extract_strided_slice %6 {offsets = [1, 0], sizes = [1, 1024], strides = [1, 1]} : vector<4x1024xf32> to vector<1x1024xf32>
    %152 = vector.broadcast %150 : f32 to vector<1x1024xf32>
    %153 = arith.mulf %152, %151 : vector<1x1024xf32>
    %154 = arith.addf %149, %153 : vector<1x1024xf32>
    %c2_52 = arith.constant 2 : index
    %c4_53 = arith.constant 4 : index
    %155 = memref.load %arg1[%c2_52, %c4_53] : memref<4x5xf32, #tpu.memory_space<smem>>
    %156 = vector.extract_strided_slice %6 {offsets = [2, 0], sizes = [1, 1024], strides = [1, 1]} : vector<4x1024xf32> to vector<1x1024xf32>
    %157 = vector.broadcast %155 : f32 to vector<1x1024xf32>
    %158 = arith.mulf %157, %156 : vector<1x1024xf32>
    %159 = arith.addf %154, %158 : vector<1x1024xf32>
    %c3_54 = arith.constant 3 : index
    %c4_55 = arith.constant 4 : index
    %160 = memref.load %arg1[%c3_54, %c4_55] : memref<4x5xf32, #tpu.memory_space<smem>>
    %161 = vector.extract_strided_slice %6 {offsets = [3, 0], sizes = [1, 1024], strides = [1, 1]} : vector<4x1024xf32> to vector<1x1024xf32>
    %162 = vector.broadcast %160 : f32 to vector<1x1024xf32>
    %163 = arith.mulf %162, %161 : vector<1x1024xf32>
    %164 = arith.addf %159, %163 : vector<1x1024xf32>
    %c4_56 = arith.constant 4 : index
    %165 = memref.load %arg3[%c4_56] : memref<5xf32, #tpu.memory_space<smem>>
    %cst_57 = arith.constant 0.000000e+00 : f32
    %166 = vector.broadcast %cst_57 : f32 to vector<1x1024xf32>
    %167 = arith.subf %166, %164 : vector<1x1024xf32>
    %168 = math.exp %167 : vector<1x1024xf32>
    %cst_58 = arith.constant 1.000000e+00 : f32
    %169 = vector.broadcast %cst_58 : f32 to vector<1x1024xf32>
    %170 = arith.addf %169, %168 : vector<1x1024xf32>
    %171 = tpu.reciprocal %170 : vector<1x1024xf32> -> vector<1x1024xf32>
    %172 = vector.broadcast %165 : f32 to vector<1x1024xf32>
    %173 = arith.mulf %172, %171 : vector<1x1024xf32>
    %174 = arith.addf %141, %173 : vector<1x1024xf32>
    %cst_59 = arith.constant 0.000000e+00 : f32
    %175 = vector.broadcast %cst_59 : f32 to vector<1x1024xf32>
    %176 = arith.subf %175, %174 : vector<1x1024xf32>
    %177 = math.exp %176 : vector<1x1024xf32>
    %cst_60 = arith.constant 1.000000e+00 : f32
    %178 = vector.broadcast %cst_60 : f32 to vector<1x1024xf32>
    %179 = arith.addf %178, %177 : vector<1x1024xf32>
    %180 = tpu.reciprocal %179 : vector<1x1024xf32> -> vector<1x1024xf32>
    %181 = arith.index_cast %2 : i32 to index
    %c0_61 = arith.constant 0 : index
    %c0_62 = arith.constant 0 : index
    %182 = vector.load %arg6[%181, %c0_61, %c0_62] : memref<1x1x1024xf32, #tpu.memory_space<vmem>>, vector<1x1x1024xf32>
    %183 = vector.shape_cast %182 : vector<1x1x1024xf32> to vector<1x1024xf32>
    %184 = vector.shape_cast %180 : vector<1x1024xf32> to vector<1x1x1024xf32>
    tpu.vector_store %arg6[%181, %c0_61, %c0_62], %184 {strides = array<i32>} : memref<1x1x1024xf32, #tpu.memory_space<vmem>>, vector<1x1x1024xf32>,
    %c1_i32_63 = arith.constant 1 : i32
    return
  }
  func.func @transform_0(%arg0: i32) -> (i32, i32) {
    %c0_i32 = arith.constant 0 : i32
    %c0_i32_0 = arith.constant 0 : i32
    %c0_i32_1 = arith.constant 0 : i32
    return %c0_i32, %c0_i32_0 : i32, i32
  }
  func.func @transform_1(%arg0: i32) -> i32 {
    %c0_i32 = arith.constant 0 : i32
    %c0_i32_0 = arith.constant 0 : i32
    return %c0_i32 : i32
  }
  func.func @transform_2(%arg0: i32) -> i32 {
    %c0_i32 = arith.constant 0 : i32
    %c0_i32_0 = arith.constant 0 : i32
    return %c0_i32 : i32
  }
  func.func @transform_3(%arg0: i32) -> i32 {
    %c0_i32 = arith.constant 0 : i32
    %c0_i32_0 = arith.constant 0 : i32
    return %c0_i32 : i32
  }
  func.func @transform_4(%arg0: i32) -> (i32, i32, i32) {
    %c0_i32 = arith.constant 0 : i32
    %c0_i32_0 = arith.constant 0 : i32
    %c0_i32_1 = arith.constant 0 : i32
    return %arg0, %c0_i32, %c0_i32_0 : i32, i32, i32
  }
  func.func @transform_5(%arg0: i32) -> (i32, i32, i32) {
    %c0_i32 = arith.constant 0 : i32
    %c0_i32_0 = arith.constant 0 : i32
    %c0_i32_1 = arith.constant 0 : i32
    return %arg0, %c0_i32, %c0_i32_0 : i32, i32, i32
  }
}

</mosaic_0001>

<bundles_post_ra>
// kernel: neural_network_forward.1
= control target key start
LH: loop header
LB: loop body
LE: loop exit
PB: predicated region body
PF: predicated region fallthrough
CT: control target
= control target key end

     0   :  { %11 = vsyncpa [#allocation4], 0  ;;  %s1177_s0 = inlined_call_operand.vmem [shape: f32[4,5], index: 0, kind: input, shape index: {}]   ;;  %s1178_s1 = inlined_call_operand.vmem [shape: f32[5], index: 1, kind: input, shape index: {}]   ;;  %s1179_s2 = inlined_call_operand.vmem [shape: f32[5], index: 2, kind: input, shape index: {}]   ;;  %s1180_s3 = inlined_call_operand.<no memory space> [shape: f32[1], index: 3, kind: input, shape index: {}]   ;;  %s1181_s4 = inlined_call_operand.vmem [shape: bf16[1,4,1024], index: 4, kind: input, shape index: {}]   ;;  %s1182_s5 = inlined_call_operand.vmem [shape: f32[1,1,1024], index: 5, kind: output, shape index: {}]  }
   0x1   :  { %12 = vsyncpa [#allocation6], 0  ;;  %s29_s20 = sshll.u32 %s1178_s1, 4  ;;  %s19_s23 = sshll.u32 %s1177_s0, 4  ;;  %s30_s20 = int_to_ptr.vmem [resolvable:$true] %s29_s20  ;;  %s20_s23 = int_to_ptr.vmem [resolvable:$true] %s19_s23 }
   0x2   :  { %s929_s24 = scalar_lea.vmem %s30_s20, 16  ;;  %p934_p1 = scmp.lt.s32.totalorder %s30_s20, %s30_s20 }
   0x3   :  { %p930_p0 = scmp.ne.s32.totalorder %s30_s20, %s929_s24  ;;  %p935_p2 = scmp.lt.s32.totalorder %s929_s24, %s929_s24 }
   0x5   :  { %p936_p3 = por %p935_p2, %p934_p1 }
   0x7   :  { %p937_p4 = pnand %p936_p3, %p930_p0 }
   0x9   :  { %940 = shalt.err (!%p937_p4)
}
   0xa   :  { %s969_s25 = smov [#allocation5]   ;;  %s941_s26 = scalar_lea.vmem %s20_s23, 64 }
   0xb   :  { %32 = dma.vmem_to_smem %s30_s20, 16, %s969_s25, [#allocation6]  }
   0xc   :  { %p942_p5 = scmp.ne.s32.totalorder %s20_s23, %s941_s26  ;;  %p946_p6 = scmp.lt.s32.totalorder %s20_s23, %s20_s23 }
   0xd   :  { %p947_p7 = scmp.lt.s32.totalorder %s941_s26, %s941_s26 }
   0xf   :  { %p948_p8 = por %p947_p7, %p946_p6 }
  0x11   :  { %p949_p9 = pnand %p948_p8, %p942_p5 }
  0x13   :  { %952 = shalt.err (!%p949_p9)
}
  0x14   :  { %s970_s1 = smov [#allocation3]   ;;  %s39_s28 = sshll.u32 %s1179_s2, 4  ;;  %s40_s28 = int_to_ptr.vmem [resolvable:$true] %s39_s28 }
  0x15   :  { %22 = dma.vmem_to_smem %s20_s23, 64, %s970_s1, [#allocation4]  }
  0x16   :  { %s953_s29 = scalar_lea.vmem %s40_s28, 16  ;;  %p958_p11 = scmp.lt.s32.totalorder %s40_s28, %s40_s28 }
  0x17   :  { %p954_p10 = scmp.ne.s32.totalorder %s40_s28, %s953_s29  ;;  %p959_p12 = scmp.lt.s32.totalorder %s953_s29, %s953_s29 }
  0x19   :  { %p960_p13 = por %p959_p12, %p958_p11 }
  0x1b   :  { %p961_p0 = pnand %p960_p13, %p954_p10 }
  0x1d   :  { %964 = shalt.err (!%p961_p0)
}
  0x1e   :  { %s971_s30 = smov [#allocation7]  }
  0x1f   :  { %42 = dma.vmem_to_smem %s40_s28, 16, %s971_s30, [#allocation6]  }
  0x20   :  { %965 = dma.done.wait [#allocation4], 64  }
  0x21   :  { %966 = vsyncadd [#allocation4], 4294967232 }
  0x22   :  { %967 = dma.done.wait [#allocation6], 32  }
  0x23   :  { %968 = vsyncadd [#allocation6], 4294967264 }
  0x24   :  { %56 = sfence }
  0x25   :  { %s67_s6 = sld [smem:[#allocation3]]  ;;  %v57_v0 = vld [vmem:[%s1181_s4] sm:$0xff]  ;;  %v58_v1 = vld [vmem:[%s1181_s4 + $0x8] sm:$0xff] }
  0x26   :  { %s742_s7 = sld [smem:[#allocation3 + $0x80]]  ;;  %v1018_v2 = vunpack.c.l.bf16 %v57_v0  ;;  %v1020_v3 = vunpack.c.h.bf16 %v57_v0  ;;  %v1022_v4 = vunpack.c.l.bf16 %v58_v1  ;;  %v1024_v7 = vunpack.c.h.bf16 %v58_v1 }
  0x27   :  { %s65_s2 = sld [smem:[#allocation5]] }
  0x28   :  { %s747_s12 = sld [smem:[#allocation3 + $0x100]] }
  0x29   :  { %s752_s13 = sld [smem:[#allocation3 + $0x180]] }
  0x2a   :  { %s758_s4 = sld [smem:[#allocation3 + $0x1]] }
  0x2b   :  { %v68_v5 = vstv %s67_s6  ;;  %s759_s14 = sld [smem:[#allocation3 + $0x81]] }
  0x2c   :  { %v78_v6 = vstv %s742_s7  ;;  %v69_v8 = vmul.f32 %v68_v5, %v1018_v2  ;;  %v70_v9 = vmul.f32 %v68_v5, %v1020_v3  ;;  %v71_v11 = vmul.f32 %v68_v5, %v1022_v4  ;;  %s757_s15 = sld [smem:[#allocation5 + $0x1]] }
  0x2d   :  { %v66_v10 = vstv %s65_s2  ;;  %v79_v12 = vmul.f32 %v78_v6, %v1018_v2  ;;  %v80_v13 = vmul.f32 %v78_v6, %v1020_v3  ;;  %v81_v14 = vmul.f32 %v78_v6, %v1022_v4  ;;  %s764_s16 = sld [smem:[#allocation3 + $0x101]] }
  0x2e   :  { %v104_v15 = vstv %s747_s12  ;;  %v72_v16 = vmul.f32 %v68_v5, %v1024_v7  ;;  %v82_v17 = vmul.f32 %v78_v6, %v1024_v7  ;;  %v73_v18 = vadd.f32 %v69_v8, %v66_v10  ;;  %s1042_s17 = sld [smem:[#allocation3 + $0x181]] }
  0x2f   :  { %v74_v19 = vadd.f32 %v70_v9, %v66_v10  ;;  %v75_v20 = vadd.f32 %v71_v11, %v66_v10  ;;  %v743_v21 = vrot.slane %v79_v12, 9  ;;  %v105_v22 = vmul.f32 %v104_v15, %v1018_v2  ;;  %s1049_s18 = sld [smem:[#allocation3 + $0x2]] }
  0x30   :  { %v106_v23 = vmul.f32 %v104_v15, %v1020_v3  ;;  %v744_v24 = vrot.slane %v80_v13, 9  ;;  %v745_v25 = vrot.slane %v81_v14, 9  ;;  %v107_v26 = vmul.f32 %v104_v15, %v1022_v4  ;;  %s1053_s19 = sld [smem:[#allocation3 + $0x82]] }
  0x31   :  { %v130_v27 = vstv %s752_s13  ;;  %v76_v28 = vadd.f32 %v72_v16, %v66_v10  ;;  %v746_v29 = vrot.slane %v82_v17, 9  ;;  %v108_v30 = vmul.f32 %v104_v15, %v1024_v7  ;;  %s775_s20 = sld [smem:[#allocation5 + $0x2]] }
  0x32   :  { %v99_v31 = vadd.f32 %v743_v21, %v73_v18  ;;  %v748_v32 = vrot.slane %v105_v22, 10  ;;  %v749_v33 = vrot.slane %v106_v23, 10  ;;  %v131_v34 = vmul.f32 %v130_v27, %v1018_v2  ;;  %s1068_s21 = sld [smem:[#allocation3 + $0x102]] }
  0x33   :  { %v100_v35 = vadd.f32 %v744_v24, %v74_v19  ;;  %v101_v36 = vadd.f32 %v745_v25, %v75_v20  ;;  %v750_v37 = vrot.slane %v107_v26, 10  ;;  %v132_v38 = vmul.f32 %v130_v27, %v1020_v3  ;;  %s1072_s22 = sld [smem:[#allocation3 + $0x182]] }
  0x34   :  { %v102_v39 = vadd.f32 %v746_v29, %v76_v28  ;;  %v751_v40 = vrot.slane %v108_v30, 10  ;;  %v133_v41 = vmul.f32 %v130_v27, %v1022_v4  ;;  %v134_v42 = vmul.f32 %v130_v27, %v1024_v7  ;;  %s1088_s23 = sld [smem:[#allocation3 + $0x3]] }
  0x35   :  { %v188_v43 = vstv %s758_s4  ;;  %v198_v44 = vstv %s759_s14  ;;  %v125_v45 = vadd.f32 %v748_v32, %v99_v31  ;;  %v753_v46 = vrot.slane %v131_v34, 11  ;;  %s1094_s24 = sld [smem:[#allocation5 + $0x3]] }
  0x36   :  { %v126_v47 = vadd.f32 %v749_v33, %v100_v35  ;;  %v127_v48 = vadd.f32 %v750_v37, %v101_v36  ;;  %v754_v49 = vrot.slane %v132_v38, 11  ;;  %v186_v50 = vstv %s757_s15  ;;  %s1097_s25 = sld [smem:[#allocation3 + $0x83]] }
  0x37   :  { %v128_v51 = vadd.f32 %v751_v40, %v102_v39  ;;  %v189_v52 = vmul.f32 %v188_v43, %v1018_v2  ;;  %v190_v53 = vmul.f32 %v188_v43, %v1020_v3  ;;  %v199_v54 = vmul.f32 %v198_v44, %v1018_v2  ;;  %s1104_s26 = sld [smem:[#allocation3 + $0x103]] }
  0x38   :  { %v755_v55 = vrot.slane %v133_v41, 11  ;;  %v756_v56 = vrot.slane %v134_v42, 11  ;;  %v191_v57 = vmul.f32 %v188_v43, %v1022_v4  ;;  %v224_v58 = vstv %s764_s16  ;;  %s1112_s1 = sld [smem:[#allocation3 + $0x183]] }
  0x39   :  { %v151_v59 = vadd.f32 %v753_v46, %v125_v45  ;;  %v200_v60 = vmul.f32 %v198_v44, %v1020_v3  ;;  %v152_v61 = vadd.f32 %v754_v49, %v126_v47  ;;  %v192_v62 = vmul.f32 %v188_v43, %v1024_v7  ;;  %s1130_s0 = sld [smem:[#allocation3 + $0x4]] }
  0x3a   :  { %v201_v63 = vmul.f32 %v198_v44, %v1022_v4  ;;  %v193_v0 = vadd.f32 %v189_v52, %v186_v50  ;;  %v202_v1 = vmul.f32 %v198_v44, %v1024_v7  ;;  %v760_v5 = vrot.slane %v199_v54, 9  ;;  %s1136_s27 = sld [smem:[#allocation5 + $0x4]] }
  0x3b   :  { %v225_v6 = vmul.f32 %v224_v58, %v1018_v2  ;;  %v1057_v8 = vadd.f32 %v755_v55, %v127_v48  ;;  %v1059_v9 = vadd.f32 %v756_v56, %v128_v51  ;;  %v194_v10 = vadd.f32 %v190_v53, %v186_v50  ;;  %s813_s28 = sld [smem:[#allocation3 + $0x84]] }
  0x3c   :  { %v195_v11 = vadd.f32 %v191_v57, %v186_v50  ;;  %v156_v12 = vsub.f32 0.0, %v151_v59  ;;  %v761_v13 = vrot.slane %v200_v60, 9  ;;  %v226_v14 = vmul.f32 %v224_v58, %v1020_v3  ;;  %s818_s29 = sld [smem:[#allocation3 + $0x104]] }
  0x3d   :  { %v250_v15 = vstv %s1042_s17  ;;  %v157_v16 = vsub.f32 0.0, %v152_v61  ;;  %v196_v17 = vadd.f32 %v192_v62, %v186_v50  ;;  %v762_v18 = vrot.slane %v201_v63, 9  ;;  %s1149_s30 = sld [smem:[#allocation3 + $0x184]] }
  0x3e   :  { %v227_v19 = vmul.f32 %v224_v58, %v1022_v4  ;;  %v763_v20 = vrot.slane %v202_v1, 9  ;;  %v219_v21 = vadd.f32 %v760_v5, %v193_v0  ;;  %v228_v22 = vmul.f32 %v224_v58, %v1024_v7  ;;  %s155_s6 = sld [smem:[#allocation7]] }
  0x3f   :  { %v765_v23 = vrot.slane %v225_v6, 10  ;;  %v158_v24 = vsub.f32 0.0, %v1057_v8  ;;  %v251_v25 = vmul.f32 %v250_v15, %v1018_v2  ;;  %v159_v26 = vsub.f32 0.0, %v1059_v9  ;;  %s774_s7 = sld [smem:[#allocation7 + $0x1]] }
  0x40   :  { %v160_v27 = vmul.f32 1.442695, %v156_v12  ;;  %v220_v28 = vadd.f32 %v761_v13, %v194_v10  ;;  %v766_v29 = vrot.slane %v226_v14, 10  ;;  %v221_v30 = vadd.f32 %v762_v18, %v195_v11  ;;  %s792_s8 = sld [smem:[#allocation7 + $0x2]] }
  0x41   :  { %v767_v31 = vrot.slane %v227_v19, 10  ;;  %v308_v32 = vstv %s1049_s18  ;;  %v318_v33 = vstv %s1053_s19  ;;  %v162_v34 = vmul.f32 1.442695, %v157_v16  ;;  %s1171_s10 = sld [smem:[#allocation7 + $0x3]] }
  0x42   :  { %v222_v35 = vadd.f32 %v763_v20, %v196_v17  ;;  %v768_v36 = vrot.slane %v228_v22, 10  ;;  %v245_v37 = vadd.f32 %v765_v23, %v219_v21  ;;  %v252_v38 = vmul.f32 %v250_v15, %v1020_v3 }
  0x43   :  { %v253_v39 = vmul.f32 %v250_v15, %v1022_v4  ;;  %v254_v40 = vmul.f32 %v250_v15, %v1024_v7  ;;  %v770_v41 = vrot.slane %v251_v25, 11  ;;  %v246_v42 = vadd.f32 %v766_v29, %v220_v28 }
  0x44   :  { %v309_v43 = vmul.f32 %v308_v32, %v1018_v2  ;;  %v310_v44 = vmul.f32 %v308_v32, %v1020_v3  ;;  %v319_v45 = vmul.f32 %v318_v33, %v1018_v2  ;;  %v247_v46 = vadd.f32 %v767_v31, %v221_v30 }
  0x45   :  { %v306_v47 = vstv %s775_s20  ;;  %v311_v48 = vmul.f32 %v308_v32, %v1022_v4  ;;  %v320_v49 = vmul.f32 %v318_v33, %v1020_v3  ;;  %v248_v50 = vadd.f32 %v768_v36, %v222_v35 }
  0x46   :  { %v312_v51 = vmul.f32 %v308_v32, %v1024_v7  ;;  %v321_v52 = vmul.f32 %v318_v33, %v1022_v4  ;;  %v322_v53 = vmul.f32 %v318_v33, %v1024_v7  ;;  %v771_v54 = vrot.slane %v252_v38, 11 }
  0x47   :  { %v772_v55 = vrot.slane %v253_v39, 11  ;;  %v773_v56 = vrot.slane %v254_v40, 11  ;;  %v271_v57 = vadd.f32 %v770_v41, %v245_v37  ;;  %v313_v58 = vadd.f32 %v309_v43, %v306_v47 }
  0x48   :  { %v314_v59 = vadd.f32 %v310_v44, %v306_v47  ;;  %v778_v60 = vrot.slane %v319_v45, 9  ;;  %v344_v61 = vstv %s1068_s21  ;;  %v315_v62 = vadd.f32 %v311_v48, %v306_v47 }
  0x49   :  { %v779_v63 = vrot.slane %v320_v49, 9  ;;  %v345_v0 = vmul.f32 %v344_v61, %v1018_v2  ;;  %v370_v1 = vstv %s1072_s22  ;;  %v316_v5 = vadd.f32 %v312_v51, %v306_v47 }
  0x4a   :  { %v780_v6 = vrot.slane %v321_v52, 9  ;;  %v781_v8 = vrot.slane %v322_v53, 9  ;;  %v346_v10 = vmul.f32 %v344_v61, %v1020_v3  ;;  %833 = vpow2.f32 %v160_v27 }
  0x4b   :  { %v164_v11 = vmul.f32 1.442695, %v158_v24  ;;  %v347_v12 = vmul.f32 %v344_v61, %v1022_v4  ;;  %v348_v13 = vmul.f32 %v344_v61, %v1024_v7  ;;  %v272_v14 = vadd.f32 %v771_v54, %v246_v42 }
  0x4c   :  { %v339_v15 = vadd.f32 %v778_v60, %v313_v58  ;;  %v783_v16 = vrot.slane %v345_v0, 10  ;;  %v371_v17 = vmul.f32 %v370_v1, %v1018_v2  ;;  %v273_v18 = vadd.f32 %v772_v55, %v247_v46 }
  0x4d   :  { %v274_v19 = vadd.f32 %v773_v56, %v248_v50  ;;  %v276_v20 = vsub.f32 0.0, %v271_v57  ;;  %v340_v21 = vadd.f32 %v779_v63, %v314_v59  ;;  %v341_v22 = vadd.f32 %v780_v6, %v315_v62 }
  0x4e   :  { %v342_v23 = vadd.f32 %v781_v8, %v316_v5  ;;  %v784_v25 = vrot.slane %v346_v10, 10  ;;  %v372_v24 = vmul.f32 %v370_v1, %v1020_v3  ;;  %v785_v27 = vrot.slane %v347_v12, 10 }
  0x4f   :  { %v786_v28 = vrot.slane %v348_v13, 10  ;;  %v373_v29 = vmul.f32 %v370_v1, %v1022_v4  ;;  %v374_v30 = vmul.f32 %v370_v1, %v1024_v7  ;;  %835 = vpow2.f32 %v162_v34 }
  0x50   :  { %v166_v31 = vmul.f32 1.442695, %v159_v26  ;;  %v365_v32 = vadd.f32 %v783_v16, %v339_v15  ;;  %v788_v33 = vrot.slane %v371_v17, 11  ;;  %837 = vpow2.f32 %v164_v11 }
  0x51   :  { %v277_v35 = vsub.f32 0.0, %v272_v14  ;;  %v278_v36 = vsub.f32 0.0, %v273_v18  ;;  %v428_v37 = vstv %s1088_s23  ;;  %v279_v38 = vsub.f32 0.0, %v274_v19 }
  0x52   :  { %v280_v39 = vmul.f32 1.442695, %v276_v20  ;;  %v366_v40 = vadd.f32 %v784_v25, %v340_v21  ;;  %v789_v41 = vrot.slane %v372_v24, 11  ;;  %v367_v42 = vadd.f32 %v785_v27, %v341_v22 }
  0x53   :  { %v368_v43 = vadd.f32 %v786_v28, %v342_v23  ;;  %v790_v34 = vrot.slane %v373_v29, 11  ;;  %v791_v44 = vrot.slane %v374_v30, 11  ;;  %839 = vpow2.f32 %v166_v31 }
  0x54   :  { %v391_v9 = vadd.f32 %v788_v33, %v365_v32  ;;  %v429_v26 = vmul.f32 %v428_v37, %v1018_v2  ;;  %v430_v45 = vmul.f32 %v428_v37, %v1020_v3  ;;  %v282_v46 = vmul.f32 1.442695, %v277_v35 }
  0x55   :  { %v426_v47 = vstv %s1094_s24  ;;  %v431_v48 = vmul.f32 %v428_v37, %v1022_v4  ;;  %v432_v49 = vmul.f32 %v428_v37, %v1024_v7  ;;  %841 = vpow2.f32 %v280_v39 }
  0x56   :  { %v284_v50 = vmul.f32 1.442695, %v278_v36  ;;  %v392_v51 = vadd.f32 %v789_v41, %v366_v40  ;;  %v438_v52 = vstv %s1097_s25  ;;  %v286_v53 = vmul.f32 1.442695, %v279_v38 }
  0x57   :  { %v393_v54 = vadd.f32 %v790_v34, %v367_v42  ;;  %v394_v55 = vadd.f32 %v791_v44, %v368_v43  ;;  %v439_v56 = vmul.f32 %v438_v52, %v1018_v2  ;;  %v1115_v57 = vpop.eup %833  ;;  %v396_v58 = vsub.f32 0.0, %v391_v9 }
  0x58   :  { %v433_v59 = vadd.f32 %v429_v26, %v426_v47  ;;  %v434_v60 = vadd.f32 %v430_v45, %v426_v47  ;;  %v440_v61 = vmul.f32 %v438_v52, %v1020_v3  ;;  %v435_v62 = vadd.f32 %v431_v48, %v426_v47 }
  0x59   :  { %v436_v63 = vadd.f32 %v432_v49, %v426_v47  ;;  %v441_v0 = vmul.f32 %v438_v52, %v1022_v4  ;;  %v442_v1 = vmul.f32 %v438_v52, %v1024_v7  ;;  %v397_v5 = vsub.f32 0.0, %v392_v51 }
  0x5a   :  { %v796_v6 = vrot.slane %v439_v56, 9  ;;  %v797_v8 = vrot.slane %v440_v61, 9  ;;  %v464_v10 = vstv %s1104_s26  ;;  %v398_v24 = vsub.f32 0.0, %v393_v54 }
  0x5b   :  { %v798_v11 = vrot.slane %v441_v0, 9  ;;  %v799_v12 = vrot.slane %v442_v1, 9  ;;  %v465_v13 = vmul.f32 %v464_v10, %v1018_v2  ;;  %v466_v14 = vmul.f32 %v464_v10, %v1020_v3 }
  0x5c   :  { %v459_v15 = vadd.f32 %v796_v6, %v433_v59  ;;  %v460_v16 = vadd.f32 %v797_v8, %v434_v60  ;;  %v467_v17 = vmul.f32 %v464_v10, %v1022_v4  ;;  %v468_v18 = vmul.f32 %v464_v10, %v1024_v7  ;;  %v1125_v19 = vpop.eup %835 }
  0x5d   :  { %v461_v20 = vadd.f32 %v798_v11, %v435_v62  ;;  %v462_v21 = vadd.f32 %v799_v12, %v436_v63  ;;  %v801_v22 = vrot.slane %v465_v13, 10  ;;  %v802_v23 = vrot.slane %v466_v14, 10  ;;  %v1127_v25 = vpop.eup %837 }
  0x5e   :  { %v803_v27 = vrot.slane %v467_v17, 10  ;;  %v804_v28 = vrot.slane %v468_v18, 10  ;;  %v490_v29 = vstv %s1112_s1  ;;  %v399_v40 = vsub.f32 0.0, %v394_v55 }
  0x5f   :  { %v485_v30 = vadd.f32 %v801_v22, %v459_v15  ;;  %v486_v31 = vadd.f32 %v802_v23, %v460_v16  ;;  %v491_v32 = vmul.f32 %v490_v29, %v1018_v2  ;;  %v492_v33 = vmul.f32 %v490_v29, %v1020_v3 }
  0x60   :  { %v487_v35 = vadd.f32 %v803_v27, %v461_v20  ;;  %v488_v36 = vadd.f32 %v804_v28, %v462_v21  ;;  %v493_v37 = vmul.f32 %v490_v29, %v1022_v4  ;;  %v494_v38 = vmul.f32 %v490_v29, %v1024_v7  ;;  %v1138_v39 = vpop.eup %839 }
  0x61   :  { %v400_v41 = vmul.f32 1.442695, %v396_v58  ;;  %v806_v42 = vrot.slane %v491_v32, 11  ;;  %v807_v43 = vrot.slane %v492_v33, 11  ;;  %843 = vpow2.f32 %v282_v46 }
  0x62   :  { %v402_v34 = vmul.f32 1.442695, %v397_v5  ;;  %v808_v44 = vrot.slane %v493_v37, 11  ;;  %v809_v9 = vrot.slane %v494_v38, 11  ;;  %v1140_v26 = vpop.eup %841  ;;  %845 = vpow2.f32 %v284_v50 }
  0x63   :  { %v511_v45 = vadd.f32 %v806_v42, %v485_v30  ;;  %v512_v47 = vadd.f32 %v807_v43, %v486_v31  ;;  %847 = vpow2.f32 %v286_v53  ;;  %v404_v48 = vmul.f32 1.442695, %v398_v24 }
  0x64   :  { %v513_v49 = vadd.f32 %v808_v44, %v487_v35  ;;  %v514_v51 = vadd.f32 %v809_v9, %v488_v36  ;;  %849 = vpow2.f32 %v400_v41  ;;  %v406_v52 = vmul.f32 1.442695, %v399_v40 }
  0x65   :  { %v516_v54 = vsub.f32 0.0, %v511_v45  ;;  %v517_v55 = vsub.f32 0.0, %v512_v47  ;;  %851 = vpow2.f32 %v402_v34  ;;  %v548_v46 = vstv %s1130_s0 }
  0x66   :  { %v518_v56 = vsub.f32 0.0, %v513_v49  ;;  %v519_v58 = vsub.f32 0.0, %v514_v51  ;;  %853 = vpow2.f32 %v404_v48  ;;  %v546_v50 = vstv %s1136_s27 }
  0x67   :  { %v520_v59 = vmul.f32 1.442695, %v516_v54  ;;  %v522_v60 = vmul.f32 1.442695, %v517_v55  ;;  %855 = vpow2.f32 %v406_v52  ;;  %v549_v53 = vmul.f32 %v548_v46, %v1018_v2 }
  0x68   :  { %v550_v61 = vmul.f32 %v548_v46, %v1020_v3  ;;  %v551_v62 = vmul.f32 %v548_v46, %v1022_v4  ;;  %v168_v63 = vadd.f32 1.0, %v1115_v57  ;;  %v552_v0 = vmul.f32 %v548_v46, %v1024_v7 }
  0x69   :  { %857 = vpow2.f32 %v520_v59  ;;  %v558_v1 = vstv %s813_s28  ;;  %v524_v5 = vmul.f32 1.442695, %v518_v56  ;;  %v526_v6 = vmul.f32 1.442695, %v519_v58 }
  0x6a   :  { %859 = vpow2.f32 %v522_v60  ;;  %v553_v8 = vadd.f32 %v549_v53, %v546_v50  ;;  %v554_v10 = vadd.f32 %v550_v61, %v546_v50  ;;  %v555_v11 = vadd.f32 %v551_v62, %v546_v50 }
  0x6b   :  { %v559_v12 = vmul.f32 %v558_v1, %v1018_v2  ;;  %v560_v13 = vmul.f32 %v558_v1, %v1020_v3  ;;  %v556_v14 = vadd.f32 %v552_v0, %v546_v50  ;;  %v561_v15 = vmul.f32 %v558_v1, %v1022_v4 }
  0x6c   :  { %v562_v57 = vmul.f32 %v558_v1, %v1024_v7  ;;  %v584_v16 = vstv %s818_s29  ;;  %v169_v42 = vadd.f32 1.0, %v1125_v19  ;;  %v170_v43 = vadd.f32 1.0, %v1127_v25 }
  0x6d   :  { %v814_v17 = vrot.slane %v559_v12, 9  ;;  %v815_v18 = vrot.slane %v560_v13, 9  ;;  %v585_v20 = vmul.f32 %v584_v16, %v1018_v2  ;;  %v586_v21 = vmul.f32 %v584_v16, %v1020_v3 }
  0x6e   :  { %v844_v22 = vpop.eup %843  ;;  %v816_v23 = vrot.slane %v561_v15, 9  ;;  %v817_v24 = vrot.slane %v562_v57, 9  ;;  %v587_v27 = vmul.f32 %v584_v16, %v1022_v4  ;;  %v588_v28 = vmul.f32 %v584_v16, %v1024_v7 }
  0x6f   :  { %v846_v29 = vpop.eup %845  ;;  %v579_v30 = vadd.f32 %v814_v17, %v553_v8  ;;  %v580_v31 = vadd.f32 %v815_v18, %v554_v10  ;;  %v819_v32 = vrot.slane %v585_v20, 10  ;;  %v820_v33 = vrot.slane %v586_v21, 10 }
  0x70   :  { %v848_v35 = vpop.eup %847  ;;  %v581_v36 = vadd.f32 %v816_v23, %v555_v11  ;;  %v582_v37 = vadd.f32 %v817_v24, %v556_v14  ;;  %v821_v38 = vrot.slane %v587_v27, 10  ;;  %v822_v40 = vrot.slane %v588_v28, 10 }
  0x71   :  { %v850_v41 = vpop.eup %849  ;;  %861 = vpow2.f32 %v524_v5  ;;  %v610_v34 = vstv %s1149_s30  ;;  %v605_v9 = vadd.f32 %v819_v32, %v579_v30  ;;  %v606_v45 = vadd.f32 %v820_v33, %v580_v31 }
  0x72   :  { %v852_v44 = vpop.eup %851  ;;  %v611_v47 = vmul.f32 %v610_v34, %v1018_v2  ;;  %v612_v48 = vmul.f32 %v610_v34, %v1020_v3  ;;  %v607_v49 = vadd.f32 %v821_v38, %v581_v36  ;;  %v608_v51 = vadd.f32 %v822_v40, %v582_v37 }
  0x73   :  { %v613_v52 = vmul.f32 %v610_v34, %v1022_v4  ;;  %v614_v54 = vmul.f32 %v610_v34, %v1024_v7  ;;  %v854_v55 = vpop.eup %853  ;;  %v171_v19 = vadd.f32 1.0, %v1138_v39  ;;  %863 = vpow2.f32 %v526_v6 }
  0x74   :  { %v824_v25 = vrot.slane %v611_v47, 11  ;;  %v825_v46 = vrot.slane %v612_v48, 11  ;;  %v856_v56 = vpop.eup %855  ;;  %865 = vrcp.f32 %v168_v63  ;;  %v288_v58 = vadd.f32 1.0, %v1140_v26 }
  0x75   :  { %v826_v59 = vrot.slane %v613_v52, 11  ;;  %v827_v2 = vrot.slane %v614_v54, 11  ;;  %867 = vrcp.f32 %v169_v42  ;;  %v289_v3 = vadd.f32 1.0, %v844_v22 }
  0x76   :  { %v858_v60 = vpop.eup %857  ;;  %v631_v50 = vadd.f32 %v824_v25, %v605_v9  ;;  %v632_v53 = vadd.f32 %v825_v46, %v606_v45  ;;  %869 = vrcp.f32 %v170_v43  ;;  %v290_v7 = vadd.f32 1.0, %v846_v29 }
  0x77   :  { %v860_v4 = vpop.eup %859  ;;  %v633_v61 = vadd.f32 %v826_v59, %v607_v49  ;;  %v634_v62 = vadd.f32 %v827_v2, %v608_v51  ;;  %871 = vrcp.f32 %v171_v19  ;;  %v291_v39 = vadd.f32 1.0, %v848_v35 }
  0x78   :  { %v636_v0 = vsub.f32 0.0, %v631_v50  ;;  %v637_v1 = vsub.f32 0.0, %v632_v53  ;;  %873 = vrcp.f32 %v288_v58  ;;  %v408_v11 = vadd.f32 1.0, %v850_v41 }
  0x79   :  { %v638_v63 = vsub.f32 0.0, %v633_v61  ;;  %v639_v5 = vsub.f32 0.0, %v634_v62  ;;  %875 = vrcp.f32 %v289_v3  ;;  %v409_v13 = vadd.f32 1.0, %v852_v44 }
  0x7a   :  { %v640_v26 = vmul.f32 1.442695, %v636_v0  ;;  %v642_v6 = vmul.f32 1.442695, %v637_v1  ;;  %877 = vrcp.f32 %v290_v7  ;;  %v410_v14 = vadd.f32 1.0, %v854_v55 }
  0x7b   :  { %v644_v8 = vmul.f32 1.442695, %v638_v63  ;;  %879 = vrcp.f32 %v291_v39  ;;  %v646_v10 = vmul.f32 1.442695, %v639_v5  ;;  %v411_v15 = vadd.f32 1.0, %v856_v56 }
  0x7c   :  { %881 = vpow2.f32 %v640_v26  ;;  %v528_v16 = vadd.f32 1.0, %v858_v60  ;;  %v529_v18 = vadd.f32 1.0, %v860_v4  ;;  %v176_v28 = vstv %s155_s6 }
  0x7d   :  { %883 = vpow2.f32 %v642_v6  ;;  %v64_v35 = vstv %s1180_s3  ;;  %v296_v37 = vstv %s774_s7  ;;  %v416_v34 = vstv %s792_s8  ;;  %s828_s3 = sld [smem:[#allocation7 + $0x4]] }
  0x7e   :  { %v862_v12 = vpop.eup %861  ;;  %885 = vpow2.f32 %v644_v8  ;;  %v536_v4 = vstv %s1171_s10 }
  0x7f   :  { %887 = vpow2.f32 %v646_v10  ;;  %v530_v21 = vadd.f32 1.0, %v862_v12 }
  0x80   :  { %v864_v57 = vpop.eup %863  ;;  %889 = vrcp.f32 %v408_v11 }
  0x81   :  { %v866_v17 = vpop.eup %865  ;;  %891 = vrcp.f32 %v409_v13  ;;  %v531_v23 = vadd.f32 1.0, %v864_v57 }
  0x82   :  { %v868_v20 = vpop.eup %867  ;;  %893 = vrcp.f32 %v410_v14  ;;  %v177_v32 = vmul.f32 %v866_v17, %v176_v28 }
  0x83   :  { %v870_v22 = vpop.eup %869  ;;  %895 = vrcp.f32 %v411_v15  ;;  %v178_v36 = vmul.f32 %v868_v20, %v176_v28  ;;  %v656_v14 = vstv %s828_s3 }
  0x84   :  { %v872_v24 = vpop.eup %871  ;;  %897 = vrcp.f32 %v528_v16  ;;  %v179_v40 = vmul.f32 %v870_v22, %v176_v28  ;;  %v181_v45 = vadd.f32 %v177_v32, %v64_v35 }
  0x85   :  { %v874_v27 = vpop.eup %873  ;;  %899 = vrcp.f32 %v529_v18  ;;  %v180_v43 = vmul.f32 %v872_v24, %v176_v28  ;;  %v182_v51 = vadd.f32 %v178_v36, %v64_v35 }
  0x86   :  { %v876_v29 = vpop.eup %875  ;;  %901 = vrcp.f32 %v530_v21  ;;  %v297_v47 = vmul.f32 %v874_v27, %v296_v37  ;;  %v183_v19 = vadd.f32 %v179_v40, %v64_v35 }
  0x87   :  { %v878_v30 = vpop.eup %877  ;;  %903 = vrcp.f32 %v531_v23  ;;  %v298_v52 = vmul.f32 %v876_v29, %v296_v37  ;;  %v184_v56 = vadd.f32 %v180_v43, %v64_v35 }
  0x88   :  { %v880_v31 = vpop.eup %879  ;;  %v299_v25 = vmul.f32 %v878_v30, %v296_v37  ;;  %v301_v2 = vadd.f32 %v297_v47, %v181_v45 }
  0x89   :  { %v882_v33 = vpop.eup %881  ;;  %v300_v58 = vmul.f32 %v880_v31, %v296_v37  ;;  %v302_v50 = vadd.f32 %v298_v52, %v182_v51  ;;  %v972_v51 = vmov 1966171168  }
  0x8a   :  { %v884_v38 = vpop.eup %883  ;;  %v648_v41 = vadd.f32 1.0, %v882_v33  ;;  %v303_v61 = vadd.f32 %v299_v25, %v183_v19  ;;  %v690_v52 = vunpack.c.l.s4 %v972_v51 }
  0x8b   :  { %v886_v42 = vpop.eup %885  ;;  %v649_v44 = vadd.f32 1.0, %v884_v38  ;;  %v304_v0 = vadd.f32 %v300_v58, %v184_v56 }
  0x8c   :  { %v888_v9 = vpop.eup %887  ;;  %v650_v48 = vadd.f32 1.0, %v886_v42  ;;  %905 = vrcp.f32 %v648_v41 }
  0x8d   :  { %v890_v49 = vpop.eup %889  ;;  %v651_v54 = vadd.f32 1.0, %v888_v9  ;;  %907 = vrcp.f32 %v649_v44 }
  0x8e   :  { %v892_v55 = vpop.eup %891  ;;  %909 = vrcp.f32 %v650_v48  ;;  %v417_v60 = vmul.f32 %v890_v49, %v416_v34 }
  0x8f   :  { %v894_v46 = vpop.eup %893  ;;  %911 = vrcp.f32 %v651_v54  ;;  %v418_v53 = vmul.f32 %v892_v55, %v416_v34  ;;  %v692_v54 = vlaneseq  ;;  %v691_v55 = vunpack.c.0.s8 %v690_v52 }
  0x90   :  { %v896_v59 = vpop.eup %895  ;;  %v419_v62 = vmul.f32 %v894_v46, %v416_v34  ;;  %v421_v5 = vadd.f32 %v417_v60, %v301_v2 }
  0x91   :  { %v898_v3 = vpop.eup %897  ;;  %v420_v1 = vmul.f32 %v896_v59, %v416_v34  ;;  %v422_v6 = vadd.f32 %v418_v53, %v302_v50  ;;  %v693_v19 = vshrl.u32 %v692_v54, 7 }
  0x92   :  { %v900_v7 = vpop.eup %899  ;;  %v537_v26 = vmul.f32 %v898_v3, %v536_v4  ;;  %v423_v10 = vadd.f32 %v419_v62, %v303_v61 }
  0x93   :  { %v902_v39 = vpop.eup %901  ;;  %v538_v8 = vmul.f32 %v900_v7, %v536_v4  ;;  %v424_v12 = vadd.f32 %v420_v1, %v304_v0  ;;  %v694_v25 = vsub.s32 %v691_v55, %v693_v19 }
  0x94   :  { %v904_v63 = vpop.eup %903  ;;  %v539_v11 = vmul.f32 %v902_v39, %v536_v4  ;;  %v541_v15 = vadd.f32 %v537_v26, %v421_v5 }
  0x95   :  { %v540_v13 = vmul.f32 %v904_v63, %v536_v4  ;;  %v542_v16 = vadd.f32 %v538_v8, %v422_v6 }
  0x96   :  { %v543_v18 = vadd.f32 %v539_v11, %v423_v10 }
  0x97   :  { %v544_v22 = vadd.f32 %v540_v13, %v424_v12 }
  0x99   :  { %v906_v57 = vpop.eup %905 }
  0x9a   :  { %v908_v17 = vpop.eup %907  ;;  %v657_v20 = vmul.f32 %v906_v57, %v656_v14 }
  0x9b   :  { %v910_v21 = vpop.eup %909  ;;  %v658_v23 = vmul.f32 %v908_v17, %v656_v14 }
  0x9c   :  { %v912_v24 = vpop.eup %911  ;;  %v659_v27 = vmul.f32 %v910_v21, %v656_v14  ;;  %v661_v28 = vadd.f32 %v657_v20, %v541_v15 }
  0x9d   :  { %v660_v29 = vmul.f32 %v912_v24, %v656_v14  ;;  %v662_v30 = vadd.f32 %v658_v23, %v542_v16 }
  0x9e   :  { %v663_v31 = vadd.f32 %v659_v27, %v543_v18  ;;  %v665_v32 = vsub.f32 0.0, %v661_v28 }
  0x9f   :  { %v664_v33 = vadd.f32 %v660_v29, %v544_v22  ;;  %v666_v35 = vsub.f32 0.0, %v662_v30 }
  0xa0   :  { %v667_v36 = vsub.f32 0.0, %v663_v31  ;;  %v669_v37 = vmul.f32 1.442695, %v665_v32 }
  0xa1   :  { %v668_v38 = vsub.f32 0.0, %v664_v33  ;;  %v671_v40 = vmul.f32 1.442695, %v666_v35 }
  0xa2   :  { %913 = vpow2.f32 %v669_v37  ;;  %v673_v41 = vmul.f32 1.442695, %v667_v36 }
  0xa3   :  { %915 = vpow2.f32 %v671_v40  ;;  %v675_v42 = vmul.f32 1.442695, %v668_v38 }
  0xa4   :  { %917 = vpow2.f32 %v673_v41 }
  0xa5   :  { %919 = vpow2.f32 %v675_v42 }
  0xaf   :  { %v914_v43 = vpop.eup %913 }
  0xb0   :  { %v916_v34 = vpop.eup %915  ;;  %v677_v44 = vadd.f32 1.0, %v914_v43 }
  0xb1   :  { %v918_v9 = vpop.eup %917  ;;  %v678_v45 = vadd.f32 1.0, %v916_v34 }
  0xb2   :  { %v920_v47 = vpop.eup %919  ;;  %v679_v48 = vadd.f32 1.0, %v918_v9  ;;  %921 = vrcp.f32 %v677_v44 }
  0xb3   :  { %v680_v49 = vadd.f32 1.0, %v920_v47  ;;  %923 = vrcp.f32 %v678_v45 }
  0xb4   :  { %925 = vrcp.f32 %v679_v48 }
  0xb5   :  { %927 = vrcp.f32 %v680_v49 }
  0xbf   :  { %v922_v46 = vpop.eup %921 }
  0xc0   :  { %v924_v56 = vpop.eup %923  ;;  %v695_v58 = vrot.slane %v922_v46, %v694_v25 }
  0xc1   :  { %v926_v59 = vpop.eup %925  ;;  %v702_v2 = vrot.slane %v924_v56, %v694_v25 }
  0xc2   :  { %v928_v60 = vpop.eup %927  ;;  %v709_v3 = vrot.slane %v926_v59, %v694_v25 }
  0xc3   :  { %v716_v50 = vrot.slane %v928_v60, %v694_v25  ;;  %v717_v53 = vcombine.low %v695_v58, %v702_v2 }
  0xc5   :  { %v718_v4 = vcombine.low %v709_v3, %v716_v50  ;;  %v725_v7 = vrot.slane %v717_v53, %v694_v25 }
  0xc7   :  { %v732_v61 = vrot.slane %v718_v4, %v694_v25 }
  0xc9   :  { %v733_v62 = vcombine.low %v725_v7, %v732_v61 }
  0xcb   :  { %735 = vst [vmem:[%s1182_s5] sm:$0xff] %v733_v62 }
  0xcc   :  { %740 = vsyncpa [#allocation4], 1 }
  0xcd   :  { %741 = vsyncpa [#allocation6], 1 }

</bundles_post_ra>
